<compile_context>
chip_gen: v7x
topology: tpu7x:2x2x1
jax: 0.10.0
libtpu: 0.0.40
codegen_flags: <defaults>
</compile_context>

<pallas_src>
import jax
import jax.numpy as jnp
from jax.experimental import pallas as pl
from jax.experimental.pallas import tpu as pltpu

LANE = 128            # lane width: last-dim padding target
HID1, HID2 = 20, 10   # logical hidden widths of the SAE
HP = 128              # padded hidden width (lane-dense)


def _round_up(n, m):
    return (n + m - 1) // m * m


def sae_kernel(x_ref, w1_ref, b1_ref, w2_ref, b2_ref,
               w3_ref, b3_ref, w4_ref, b4_ref, out_ref):
    """One batch tile of the fused 4-layer SAE forward.

    x tile  : (TB, Mp) bf16, streamed per grid step.
    weights : bf16, biases f32 -- VMEM-resident across the whole grid.
    out tile: (TB, Mp) bf16, lane-dense stores.
    """
    def sigmoid(z):
        # exp -> EUP, approx reciprocal -> EUP; keeps VALU slots free.
        return pl.reciprocal(1.0 + jnp.exp(-z), approx=True)

    x = x_ref[...]
    h1 = sigmoid(jnp.dot(x, w1_ref[...], preferred_element_type=jnp.float32)
                 + b1_ref[...]).astype(jnp.bfloat16)
    h2 = sigmoid(jnp.dot(h1, w2_ref[...], preferred_element_type=jnp.float32)
                 + b2_ref[...]).astype(jnp.bfloat16)
    h3 = sigmoid(jnp.dot(h2, w3_ref[...], preferred_element_type=jnp.float32)
                 + b3_ref[...]).astype(jnp.bfloat16)
    y = jnp.dot(h3, w4_ref[...], preferred_element_type=jnp.float32) + b4_ref[...]
    out_ref[...] = y.astype(out_ref.dtype)


def sae_forward(x, kp, *, tb=None, vmem_limit_bytes=48 * 1024 * 1024):
    """x: (B, nb_movies) f32.  kp: padded/bf16 kernel params from prepare_params."""
    B, M = x.shape
    Mp = kp["w1"].shape[0]
    assert M <= Mp

    if tb is None:
        # v7x-safe default (64 MiB VMEM); raise to 1024-2048 on v5e/v6e if desired.
        tb = 512
    tb = _round_up(min(tb, _round_up(B, 16)), 16)   # bf16 sublane packing
    Bp = _round_up(B, tb)

    # Pad batch + movie dims; cast input to bf16 for HBM-bandwidth savings.
    xp = jnp.zeros((Bp, Mp), jnp.bfloat16).at[:B, :M].set(x.astype(jnp.bfloat16))

    def resident(arr):  # weights/biases: same block for every grid step -> fetched once
        return pl.BlockSpec(arr.shape, lambda i: (0, 0))

    out_p = pl.pallas_call(
        sae_kernel,
        out_shape=jax.ShapeDtypeStruct((Bp, Mp), jnp.bfloat16),
        grid=(Bp // tb,),
        in_specs=[
            pl.BlockSpec((tb, Mp), lambda i: (i, 0)),       # x: streamed per tile
            resident(kp["w1"]), resident(kp["b1"]),
            resident(kp["w2"]), resident(kp["b2"]),
            resident(kp["w3"]), resident(kp["b3"]),
            resident(kp["w4"]), resident(kp["b4"]),
        ],
        out_specs=pl.BlockSpec((tb, Mp), lambda i: (i, 0)),
        compiler_params=pltpu.CompilerParams(
            dimension_semantics=("parallel",),              # megacore on v7x
            vmem_limit_bytes=vmem_limit_bytes,
        ),
    )(xp, kp["w1"], kp["b1"], kp["w2"], kp["b2"],
      kp["w3"], kp["b3"], kp["w4"], kp["b4"])

    return out_p[:B, :M]


def init_params(key, nb_movies):
    """Logical (unpadded) f32 params, (in, out) layout, PyTorch Linear-style init."""
    dims = [(nb_movies, HID1), (HID1, HID2), (HID2, HID1), (HID1, nb_movies)]
    params = {}
    keys = jax.random.split(key, 2 * len(dims))
    for i, (fan_in, fan_out) in enumerate(dims):
        bound = 1.0 / (fan_in ** 0.5)
        params[f"w{i + 1}"] = jax.random.uniform(
            keys[2 * i], (fan_in, fan_out), minval=-bound, maxval=bound,
            dtype=jnp.float32)
        params[f"b{i + 1}"] = jax.random.uniform(
            keys[2 * i + 1], (1, fan_out), minval=-bound, maxval=bound,
            dtype=jnp.float32)
    return params


def prepare_params(p, nb_movies):
    """Zero-pad to lane-dense shapes; weights -> bf16, biases stay f32."""
    Mp = _round_up(nb_movies, LANE)

    def pad_w(w, rows, cols):
        z = jnp.zeros((rows, cols), jnp.bfloat16)
        return z.at[:w.shape[0], :w.shape[1]].set(w.astype(jnp.bfloat16))

    def pad_b(b, cols):
        z = jnp.zeros((1, cols), jnp.float32)
        return z.at[:, :b.shape[1]].set(b)

    return {
        "w1": pad_w(p["w1"], Mp, HP), "b1": pad_b(p["b1"], HP),
        "w2": pad_w(p["w2"], HP, HP), "b2": pad_b(p["b2"], HP),
        "w3": pad_w(p["w3"], HP, HP), "b3": pad_b(p["b3"], HP),
        "w4": pad_w(p["w4"], HP, Mp), "b4": pad_b(p["b4"], Mp),
    }


def sae_reference(x, kp, nb_movies):
    """Pure-JAX reference matching the kernel numerics (bf16 matmul inputs, f32 math)."""
    f32, bf = jnp.float32, jnp.bfloat16
    B, M = x.shape
    Mp = kp["w1"].shape[0]
    xp = jnp.zeros((B, Mp), bf).at[:, :M].set(x.astype(bf)).astype(f32)
    h = jax.nn.sigmoid(xp @ kp["w1"].astype(f32) + kp["b1"])
    h = jax.nn.sigmoid(h.astype(bf).astype(f32) @ kp["w2"].astype(f32) + kp["b2"])
    h = jax.nn.sigmoid(h.astype(bf).astype(f32) @ kp["w3"].astype(f32) + kp["b3"])
    y = h.astype(bf).astype(f32) @ kp["w4"].astype(f32) + kp["b4"]
    return y[:, :nb_movies]


if __name__ == "__main__":
    nb_movies = 200    # synthetic stand-in for int(max(...)); padded to 256 internally
    batch = 48

    key = jax.random.PRNGKey(0)
    k_params, k_x = jax.random.split(key)

    logical_params = init_params(k_params, nb_movies)
    kernel_params = prepare_params(logical_params, nb_movies)

    # Synthetic "ratings" input: (batch, nb_movies) f32 in [0, 5].
    x = jax.random.uniform(k_x, (batch, nb_movies), dtype=jnp.float32) * 5.0

    # tb=16 at this toy size -> 3 grid steps, exercising the batch pipeline.
    out = sae_forward(x, kernel_params, tb=16)
    out = jax.block_until_ready(out)

    ref = sae_reference(x, kernel_params, nb_movies)
    assert out.shape == (batch, nb_movies)
    # bf16 I/O + approx reciprocal -> loosened tolerance vs the f32 reference.
    assert jnp.allclose(out.astype(jnp.float32), ref, atol=5e-2, rtol=5e-2), (
        float(jnp.max(jnp.abs(out.astype(jnp.float32) - ref))))

    print("KERNEL_OK")
</pallas_src>

<mosaic_0001>
module attributes {stable_mosaic.version = 11 : i64} {
  func.func @sae_kernel(%arg0: i32, %arg1: memref<16x256xbf16, #tpu.memory_space<vmem>>, %arg2: memref<256x128xbf16, #tpu.memory_space<vmem>>, %arg3: memref<1x128xf32, #tpu.memory_space<vmem>>, %arg4: memref<128x128xbf16, #tpu.memory_space<vmem>>, %arg5: memref<1x128xf32, #tpu.memory_space<vmem>>, %arg6: memref<128x128xbf16, #tpu.memory_space<vmem>>, %arg7: memref<1x128xf32, #tpu.memory_space<vmem>>, %arg8: memref<128x256xbf16, #tpu.memory_space<vmem>>, %arg9: memref<1x256xf32, #tpu.memory_space<vmem>>, %arg10: memref<16x256xbf16, #tpu.memory_space<vmem>>) attributes {dimension_semantics = [#tpu.dimension_semantics<parallel>], iteration_bounds = array<i64: 3>, scalar_prefetch = 0 : i64, scratch_operands = 0 : i64, tpu.core_type = #tpu.core_type<tc>, window_params = [{transform_indices = @transform_0, window_bounds = array<i64: 16, 256>}, {pipeline_mode = #tpu.pipeline_mode<synchronous>, transform_indices = @transform_1, window_bounds = array<i64: 256, 128>}, {pipeline_mode = #tpu.pipeline_mode<synchronous>, transform_indices = @transform_2, window_bounds = array<i64: 1, 128>}, {pipeline_mode = #tpu.pipeline_mode<synchronous>, transform_indices = @transform_3, window_bounds = array<i64: 128, 128>}, {pipeline_mode = #tpu.pipeline_mode<synchronous>, transform_indices = @transform_4, window_bounds = array<i64: 1, 128>}, {pipeline_mode = #tpu.pipeline_mode<synchronous>, transform_indices = @transform_5, window_bounds = array<i64: 128, 128>}, {pipeline_mode = #tpu.pipeline_mode<synchronous>, transform_indices = @transform_6, window_bounds = array<i64: 1, 128>}, {pipeline_mode = #tpu.pipeline_mode<synchronous>, transform_indices = @transform_7, window_bounds = array<i64: 128, 256>}, {pipeline_mode = #tpu.pipeline_mode<synchronous>, transform_indices = @transform_8, window_bounds = array<i64: 1, 256>}, {transform_indices = @transform_9, window_bounds = array<i64: 16, 256>}]} {
    %c0 = arith.constant 0 : index
    %c0_0 = arith.constant 0 : index
    %0 = vector.load %arg1[%c0, %c0_0] : memref<16x256xbf16, #tpu.memory_space<vmem>>, vector<16x256xbf16>
    %c0_1 = arith.constant 0 : index
    %c0_2 = arith.constant 0 : index
    %1 = vector.load %arg2[%c0_1, %c0_2] : memref<256x128xbf16, #tpu.memory_space<vmem>>, vector<256x128xbf16>
    %cst = arith.constant dense<0.000000e+00> : vector<16x128xf32>
    %2 = tpu.matmul %0, %1, %cst {dimension_numbers = #tpu.dot_dimension_numbers<[1], [0], [0], [1], [0, 0, 1, 1], [], []>} : vector<16x256xbf16>, vector<256x128xbf16>, vector<16x128xf32> -> vector<16x128xf32>
    %c0_3 = arith.constant 0 : index
    %c0_4 = arith.constant 0 : index
    %3 = vector.load %arg3[%c0_3, %c0_4] : memref<1x128xf32, #tpu.memory_space<vmem>>, vector<1x128xf32>
    %4 = vector.broadcast %3 : vector<1x128xf32> to vector<16x128xf32>
    %5 = arith.addf %2, %4 : vector<16x128xf32>
    %cst_5 = arith.constant 0.000000e+00 : f32
    %6 = vector.broadcast %cst_5 : f32 to vector<16x128xf32>
    %7 = arith.subf %6, %5 : vector<16x128xf32>
    %8 = math.exp %7 : vector<16x128xf32>
    %cst_6 = arith.constant 1.000000e+00 : f32
    %9 = vector.broadcast %cst_6 : f32 to vector<16x128xf32>
    %10 = arith.addf %9, %8 : vector<16x128xf32>
    %11 = tpu.reciprocal %10 {approx = true} : vector<16x128xf32> -> vector<16x128xf32>
    %12 = arith.truncf %11 : vector<16x128xf32> to vector<16x128xbf16>
    %c0_7 = arith.constant 0 : index
    %c0_8 = arith.constant 0 : index
    %13 = vector.load %arg4[%c0_7, %c0_8] : memref<128x128xbf16, #tpu.memory_space<vmem>>, vector<128x128xbf16>
    %cst_9 = arith.constant dense<0.000000e+00> : vector<16x128xf32>
    %14 = tpu.matmul %12, %13, %cst_9 {dimension_numbers = #tpu.dot_dimension_numbers<[1], [0], [0], [1], [0, 0, 1, 1], [], []>} : vector<16x128xbf16>, vector<128x128xbf16>, vector<16x128xf32> -> vector<16x128xf32>
    %c0_10 = arith.constant 0 : index
    %c0_11 = arith.constant 0 : index
    %15 = vector.load %arg5[%c0_10, %c0_11] : memref<1x128xf32, #tpu.memory_space<vmem>>, vector<1x128xf32>
    %16 = vector.broadcast %15 : vector<1x128xf32> to vector<16x128xf32>
    %17 = arith.addf %14, %16 : vector<16x128xf32>
    %cst_12 = arith.constant 0.000000e+00 : f32
    %18 = vector.broadcast %cst_12 : f32 to vector<16x128xf32>
    %19 = arith.subf %18, %17 : vector<16x128xf32>
    %20 = math.exp %19 : vector<16x128xf32>
    %cst_13 = arith.constant 1.000000e+00 : f32
    %21 = vector.broadcast %cst_13 : f32 to vector<16x128xf32>
    %22 = arith.addf %21, %20 : vector<16x128xf32>
    %23 = tpu.reciprocal %22 {approx = true} : vector<16x128xf32> -> vector<16x128xf32>
    %24 = arith.truncf %23 : vector<16x128xf32> to vector<16x128xbf16>
    %c0_14 = arith.constant 0 : index
    %c0_15 = arith.constant 0 : index
    %25 = vector.load %arg6[%c0_14, %c0_15] : memref<128x128xbf16, #tpu.memory_space<vmem>>, vector<128x128xbf16>
    %cst_16 = arith.constant dense<0.000000e+00> : vector<16x128xf32>
    %26 = tpu.matmul %24, %25, %cst_16 {dimension_numbers = #tpu.dot_dimension_numbers<[1], [0], [0], [1], [0, 0, 1, 1], [], []>} : vector<16x128xbf16>, vector<128x128xbf16>, vector<16x128xf32> -> vector<16x128xf32>
    %c0_17 = arith.constant 0 : index
    %c0_18 = arith.constant 0 : index
    %27 = vector.load %arg7[%c0_17, %c0_18] : memref<1x128xf32, #tpu.memory_space<vmem>>, vector<1x128xf32>
    %28 = vector.broadcast %27 : vector<1x128xf32> to vector<16x128xf32>
    %29 = arith.addf %26, %28 : vector<16x128xf32>
    %cst_19 = arith.constant 0.000000e+00 : f32
    %30 = vector.broadcast %cst_19 : f32 to vector<16x128xf32>
    %31 = arith.subf %30, %29 : vector<16x128xf32>
    %32 = math.exp %31 : vector<16x128xf32>
    %cst_20 = arith.constant 1.000000e+00 : f32
    %33 = vector.broadcast %cst_20 : f32 to vector<16x128xf32>
    %34 = arith.addf %33, %32 : vector<16x128xf32>
    %35 = tpu.reciprocal %34 {approx = true} : vector<16x128xf32> -> vector<16x128xf32>
    %36 = arith.truncf %35 : vector<16x128xf32> to vector<16x128xbf16>
    %c0_21 = arith.constant 0 : index
    %c0_22 = arith.constant 0 : index
    %37 = vector.load %arg8[%c0_21, %c0_22] : memref<128x256xbf16, #tpu.memory_space<vmem>>, vector<128x256xbf16>
    %cst_23 = arith.constant dense<0.000000e+00> : vector<16x256xf32>
    %38 = tpu.matmul %36, %37, %cst_23 {dimension_numbers = #tpu.dot_dimension_numbers<[1], [0], [0], [1], [0, 0, 1, 1], [], []>} : vector<16x128xbf16>, vector<128x256xbf16>, vector<16x256xf32> -> vector<16x256xf32>
    %c0_24 = arith.constant 0 : index
    %c0_25 = arith.constant 0 : index
    %39 = vector.load %arg9[%c0_24, %c0_25] : memref<1x256xf32, #tpu.memory_space<vmem>>, vector<1x256xf32>
    %40 = vector.broadcast %39 : vector<1x256xf32> to vector<16x256xf32>
    %41 = arith.addf %38, %40 : vector<16x256xf32>
    %42 = arith.truncf %41 : vector<16x256xf32> to vector<16x256xbf16>
    %c0_26 = arith.constant 0 : index
    %c0_27 = arith.constant 0 : index
    %43 = vector.load %arg10[%c0_26, %c0_27] : memref<16x256xbf16, #tpu.memory_space<vmem>>, vector<16x256xbf16>
    tpu.vector_store %arg10[%c0_26, %c0_27], %42 {strides = array<i32>} : memref<16x256xbf16, #tpu.memory_space<vmem>>, vector<16x256xbf16>,
    return
  }
  func.func @transform_0(%arg0: i32) -> (i32, i32) {
    %c0_i32 = arith.constant 0 : i32
    %c0_i32_0 = arith.constant 0 : i32
    return %arg0, %c0_i32 : i32, i32
  }
  func.func @transform_1(%arg0: i32) -> (i32, i32) {
    %c0_i32 = arith.constant 0 : i32
    %c0_i32_0 = arith.constant 0 : i32
    %c0_i32_1 = arith.constant 0 : i32
    return %c0_i32, %c0_i32_0 : i32, i32
  }
  func.func @transform_2(%arg0: i32) -> (i32, i32) {
    %c0_i32 = arith.constant 0 : i32
    %c0_i32_0 = arith.constant 0 : i32
    %c0_i32_1 = arith.constant 0 : i32
    return %c0_i32, %c0_i32_0 : i32, i32
  }
  func.func @transform_3(%arg0: i32) -> (i32, i32) {
    %c0_i32 = arith.constant 0 : i32
    %c0_i32_0 = arith.constant 0 : i32
    %c0_i32_1 = arith.constant 0 : i32
    return %c0_i32, %c0_i32_0 : i32, i32
  }
  func.func @transform_4(%arg0: i32) -> (i32, i32) {
    %c0_i32 = arith.constant 0 : i32
    %c0_i32_0 = arith.constant 0 : i32
    %c0_i32_1 = arith.constant 0 : i32
    return %c0_i32, %c0_i32_0 : i32, i32
  }
  func.func @transform_5(%arg0: i32) -> (i32, i32) {
    %c0_i32 = arith.constant 0 : i32
    %c0_i32_0 = arith.constant 0 : i32
    %c0_i32_1 = arith.constant 0 : i32
    return %c0_i32, %c0_i32_0 : i32, i32
  }
  func.func @transform_6(%arg0: i32) -> (i32, i32) {
    %c0_i32 = arith.constant 0 : i32
    %c0_i32_0 = arith.constant 0 : i32
    %c0_i32_1 = arith.constant 0 : i32
    return %c0_i32, %c0_i32_0 : i32, i32
  }
  func.func @transform_7(%arg0: i32) -> (i32, i32) {
    %c0_i32 = arith.constant 0 : i32
    %c0_i32_0 = arith.constant 0 : i32
    %c0_i32_1 = arith.constant 0 : i32
    return %c0_i32, %c0_i32_0 : i32, i32
  }
  func.func @transform_8(%arg0: i32) -> (i32, i32) {
    %c0_i32 = arith.constant 0 : i32
    %c0_i32_0 = arith.constant 0 : i32
    %c0_i32_1 = arith.constant 0 : i32
    return %c0_i32, %c0_i32_0 : i32, i32
  }
  func.func @transform_9(%arg0: i32) -> (i32, i32) {
    %c0_i32 = arith.constant 0 : i32
    %c0_i32_0 = arith.constant 0 : i32
    return %arg0, %c0_i32 : i32, i32
  }
}

</mosaic_0001>

<bundles_post_ra>
// kernel: tpu_custom_call.1
= control target key start
LH: loop header
LB: loop body
LE: loop exit
PB: predicated region body
PF: predicated region fallthrough
CT: control target
= control target key end

     0   :  { %s2104_s0 = inlined_call_operand.hbm [shape: bf16[48,256], index: 0, kind: input, shape index: {}]   ;;  %s2105_s1 = inlined_call_operand.hbm [shape: bf16[256,128], index: 1, kind: input, shape index: {}]   ;;  %s2106_s2 = inlined_call_operand.vmem [shape: f32[1,128], index: 2, kind: input, shape index: {}]   ;;  %s2107_s3 = inlined_call_operand.hbm [shape: bf16[128,128], index: 3, kind: input, shape index: {}]   ;;  %s2108_s4 = inlined_call_operand.vmem [shape: f32[1,128], index: 4, kind: input, shape index: {}]   ;;  %s2109_s5 = inlined_call_operand.hbm [shape: bf16[128,128], index: 5, kind: input, shape index: {}]   ;;  %s2110_s6 = inlined_call_operand.vmem [shape: f32[1,128], index: 6, kind: input, shape index: {}]   ;;  %s2111_s7 = inlined_call_operand.hbm [shape: bf16[128,256], index: 7, kind: input, shape index: {}]   ;;  %s2112_s8 = inlined_call_operand.vmem [shape: f32[1,256], index: 8, kind: input, shape index: {}]   ;;  %s2113_s9 = inlined_call_operand.hbm [shape: bf16[48,256], index: 9, kind: output, shape index: {}]  }
   0x1   :  { %2120 = sst [smem:[#allocation18_spill]] %s2113_s9 }
   0x2   :  { %14 = vsyncpa [#allocation3], 0 }
   0x3   :  { %16 = vsyncpa [#allocation3 + $0x1], 0 }
   0x4   :  { %17 = vsyncpa [#allocation6], 0 }
   0x5   :  { %18 = vsyncpa [#allocation9], 0 }
   0x6   :  { %19 = vsyncpa [#allocation4], 0 }
   0x7   :  { %21 = vsyncpa [#allocation4 + $0x1], 0  ;;  %s1776_s30 = smov 0   ;;  %s1778_s10 = smov 0  }
   0x8   :  { %s1780_s11 = smov 0   ;;  %s1782_s12 = smov 0  }
   0x9 LB: > { %2121 = sst [smem:[#allocation16_spill]] %s1697_s30  ;;  %s1797_s13 = sadd.s32 4294967295, %s1709_s12   ;;  %s1709_s12 = sphi %s1782_s12, %s2144_s12   ;;  %s1705_s11 = sphi %s1780_s11, %s2143_s11   ;;  %s1701_s10 = sphi %s1778_s10, %s2142_s10   ;;  %s1697_s30 = sphi %s1776_s30, %s2141_s30  }
   0xa   : > { %s1149_s14 = sadd.s32 4294967294, %s1709_s12   ;;  %p47_p0 = scmp.ne.s32.totalorder %s1701_s10, %s1697_s30 }
   0xb   : > { %p2114_p1 = scmp.eq.s32.totalorder %s1797_s13, 0  ;;  %p245_p3 = scmp.eq.s32.totalorder %s1149_s14, 2 }
   0xc   : > { %p1150_p5 = scmp.ge.s32.totalorder %s1709_s12, 1  ;;  %p252_p7 = scmp.lt.s32.totalorder %s1709_s12, 4 }
   0xd   : > { %p1806_p4 = por %p2114_p1, %p47_p0  ;;  %p1811_p6 = por %p245_p3, %p47_p0 }
   0xe   : > { %p1816_p8 = pnand %p1150_p5, %p252_p7  ;;  %s1711_s18 = smov [#allocation5]  }
   0xf   : > { %s2122_s15 = scalar_select %p1806_p4, 1, 0 }
  0x10   : > { %s2123_s16 = scalar_select %p1811_p6, 1, 0 }
  0x11   : > { %s2125_s17 = scalar_select %p1816_p8, 1, 0 }
  0x12   : > { %2124 = sst [smem:[#allocation17_spill]] %s2123_s16  ;;  %s264_s19 = sshll.u32 %s1711_s18, 4  ;;  %s1820_s19 = int_to_ptr.vmem [resolvable:$true] %s264_s19 }
  0x13   : > { %p1334_p9 = pneg %p1816_p8  ;;  %s1712_s21 = smov [#allocation8]  }
  0x14   : > { %s296_s22 = sshll.u32 %s1712_s21, 4  ;;  %s1713_s23 = smov [#allocation7]   ;;  %s1830_s22 = int_to_ptr.vmem [resolvable:$true] %s296_s22 }
  0x15   : > { %p1826_p10 = pnand %p1334_p9, %p2114_p1  ;;  %s1832_s24 = sshll.u32 %s1713_s23, 4  ;;  %s281_s24 = int_to_ptr.vmem [resolvable:$true] %s1832_s24 }
  0x16   : > { %s1493_s27 = scalar_lea.hbm %s2105_s1, 2048 }
  0x17   : > { %p1494_p11 = scmp.ne.s32.totalorder %s2105_s1, %s1493_s27  ;;  %p1842_p12 = pneg %p1826_p10 }
  0x18   : > { %p1500_p3 = scmp.lt.u32.totalorder %s1493_s27, %s2105_s1 }
  0x19   : > { %p1496_p13 = pnand %p1842_p12, %p1494_p11 }
  0x1b   : > { %p1497_p0 = pneg %p1496_p13 }
  0x1d   : > { %p1502_p5 = pnand %p1500_p3, %p1497_p0 }
  0x1f   : > { %1505 = shalt.err (!%p1502_p5)
}
  0x20   : > { %s1506_s23 = scalar_lea.vmem %s1820_s19, 2048  ;;  %p1514_p2 = scmp.lt.s32.totalorder %s1820_s19, %s1820_s19 }
  0x21   : > { %p1507_p7 = scmp.ne.s32.totalorder %s1820_s19, %s1506_s23  ;;  %p1515_p6 = scmp.lt.s32.totalorder %s1506_s23, %s1506_s23 }
  0x23   : > { %p1509_p9 = pnand %p1507_p7, %p1842_p12  ;;  %p1516_p11 = por %p1515_p6, %p1514_p2 }
  0x25   : > { %p1510_p1 = pneg %p1509_p9 }
  0x27   : > { %p1517_p13 = pnand %p1516_p11, %p1510_p1 }
  0x29   : > { %1520 = shalt.err (!%p1517_p13)
}
  0x2a   : > { %s1714_s25 = smov 64   ;;  %s1715_s26 = smov 4  }
  0x2b   : > { %1337 = dma.hbm_to_vmem [thread:$0]  (!%p1826_p10), %s2105_s1, 2048, %s1820_s19, [#allocation6], %s1714_s25, %s1714_s25, %s1715_s26  }
  0x2c   : > { %s1521_s21 = scalar_lea.hbm %s2109_s5, 1024 }
  0x2d   : > { %p1522_p1 = scmp.ne.s32.totalorder %s2109_s5, %s1521_s21  ;;  %p1528_p0 = scmp.lt.u32.totalorder %s1521_s21, %s2109_s5 }
  0x2f   : > { %p1524_p2 = pnand %p1522_p1, %p1842_p12 }
  0x31   : > { %p1525_p6 = pneg %p1524_p2 }
  0x33   : > { %p1530_p3 = pnand %p1528_p0, %p1525_p6 }
  0x35   : > { %1533 = shalt.err (!%p1530_p3)
}
  0x36   : > { %s1534_s19 = scalar_lea.vmem %s1830_s22, 1024  ;;  %p1542_p11 = scmp.lt.s32.totalorder %s1830_s22, %s1830_s22 }
  0x37   : > { %p1535_p5 = scmp.ne.s32.totalorder %s1830_s22, %s1534_s19  ;;  %p1543_p13 = scmp.lt.s32.totalorder %s1534_s19, %s1534_s19 }
  0x39   : > { %p1537_p7 = pnand %p1535_p5, %p1842_p12  ;;  %p1544_p1 = por %p1543_p13, %p1542_p11 }
  0x3b   : > { %p1538_p9 = pneg %p1537_p7 }
  0x3d   : > { %p1545_p2 = pnand %p1544_p1, %p1538_p9 }
  0x3f   : > { %1548 = shalt.err (!%p1545_p2)
}
  0x40   : > { %1343 = dma.hbm_to_vmem [thread:$0]  (!%p1826_p10), %s2109_s5, 1024, %s1830_s22, [#allocation9], %s1714_s25, %s1714_s25, %s1715_s26  }
  0x41   : > { %s1549_s28 = scalar_lea.hbm %s2107_s3, 1024 }
  0x42   : > { %p1550_p6 = scmp.ne.s32.totalorder %s2107_s3, %s1549_s28  ;;  %p1556_p5 = scmp.lt.u32.totalorder %s1549_s28, %s2107_s3 }
  0x44   : > { %p1552_p0 = pnand %p1550_p6, %p1842_p12 }
  0x46   : > { %p1553_p3 = pneg %p1552_p0 }
  0x48   : > { %p1558_p7 = pnand %p1556_p5, %p1553_p3 }
  0x4a   : > { %1561 = shalt.err (!%p1558_p7)
}
  0x4b   : > { %s1562_s19 = scalar_lea.vmem %s281_s24, 1024  ;;  %p1570_p1 = scmp.lt.s32.totalorder %s281_s24, %s281_s24 }
  0x4c   : > { %p1563_p9 = scmp.ne.s32.totalorder %s281_s24, %s1562_s19  ;;  %p1571_p2 = scmp.lt.s32.totalorder %s1562_s19, %s1562_s19 }
  0x4e   : > { %p1565_p11 = pnand %p1563_p9, %p1842_p12  ;;  %p1572_p4 = por %p1571_p2, %p1570_p1 }
  0x50   : > { %p1566_p13 = pneg %p1565_p11 }
  0x52   : > { %p1573_p8 = pnand %p1572_p4, %p1566_p13 }
  0x54   : > { %1576 = shalt.err (!%p1573_p8)
}
  0x55   : > { %1340 = dma.hbm_to_vmem [thread:$0]  (!%p1826_p10), %s2107_s3, 1024, %s281_s24, [#allocation6], %s1714_s25, %s1714_s25, %s1715_s26  }
  0x56   : > { %s1716_s30 = smov [#allocation10]   ;;  %s1577_s29 = scalar_lea.hbm %s2111_s7, 2048 }
  0x57   : > { %s312_s16 = sshll.u32 %s1716_s30, 4  ;;  %p1578_p4 = scmp.ne.s32.totalorder %s2111_s7, %s1577_s29  ;;  %s313_s16 = int_to_ptr.vmem [resolvable:$true] %s312_s16 }
  0x58   : > { %p1584_p0 = scmp.lt.u32.totalorder %s1577_s29, %s2111_s7 }
  0x59   : > { %p1580_p8 = pnand %p1578_p4, %p1842_p12 }
  0x5b   : > { %p1581_p6 = pneg %p1580_p8 }
  0x5d   : > { %p1586_p3 = pnand %p1584_p0, %p1581_p6 }
  0x5f   : > { %1589 = shalt.err (!%p1586_p3)
}
  0x60   : > { %s1590_s24 = scalar_lea.vmem %s313_s16, 2048  ;;  %p1598_p11 = scmp.lt.s32.totalorder %s313_s16, %s313_s16 }
  0x61   : > { %p1591_p5 = scmp.ne.s32.totalorder %s313_s16, %s1590_s24  ;;  %p1599_p13 = scmp.lt.s32.totalorder %s1590_s24, %s1590_s24 }
  0x63   : > { %p1593_p7 = pnand %p1591_p5, %p1842_p12  ;;  %p1600_p1 = por %p1599_p13, %p1598_p11 }
  0x65   : > { %p1594_p9 = pneg %p1593_p7 }
  0x67   : > { %p1601_p2 = pnand %p1600_p1, %p1594_p9 }
  0x69   : > { %1604 = shalt.err (!%p1601_p2)
}
  0x6a   : > { %s1717_s25 = smov 128   ;;  %s1718_s14 = smov 8  }
  0x6b   : > { %1346 = dma.hbm_to_vmem [thread:$0]  (!%p1826_p10), %s2111_s7, 2048, %s313_s16, [#allocation9], %s1717_s25, %s1717_s25, %s1718_s14  }
  0x6c   : > { %s1936_s9 = sadd.s32 1, %s1709_s12   ;;  %s34_s27 = sadd.s32 1, %s1705_s11 }
  0x6d   : > { %s31_s30 = ssub.s32 %s1709_s12, %s1936_s9  ;;  %p41_p4 = scmp.ne.s32.totalorder %s1705_s11, %s1701_s10 }
  0x6e   : > { %p32_p12 = scmp.eq.s32.totalorder %s31_s30, 0  ;;  %p42_p8 = scmp.eq.s32.totalorder %s1709_s12, 0 }
  0x6f   : > { %p2128_p0 = scmp.eq.s32.totalorder %s1797_s13, 2  ;;  %p1359_p5 = scmp.lt.s32.totalorder %s1709_s12, 3 }
  0x70   : > { %s1945_s28 = scalar_select %p32_p12, %s1705_s11, %s34_s27  }
  0x71   : > { %p43_p6 = por %p42_p8, %p41_p4  ;;  %p1949_p3 = por %p2128_p0, %p41_p4 }
  0x72   : > { %s329_s29 = sand.u32 1, %s1705_s11   ;;  %s1229_s16 = sshll.u32 %s1709_s12, 8 }
  0x73   : > { %s1156_s18 = sshll.u32 %s329_s29, 4  ;;  %s1959_s19 = scalar_lea.hbm %s2104_s0, %s1229_s16 }
  0x74   : > { %s333_s24 = scalar_lea.vmem [#allocation2], %s1156_s18  ;;  %p1963_p10 = pnand %p1359_p5, %p43_p6 }
  0x75   : > { %s341_s26 = sshll.u32 %s333_s24, 4  ;;  %s1967_s30 = scalar_lea.sflag [#allocation3], %s329_s29  ;;  %s1961_s26 = int_to_ptr.vmem [resolvable:$true] %s341_s26 }
  0x76   : > { %s1605_s27 = scalar_lea.hbm %s1959_s19, 256  ;;  %p1607_p9 = pneg %p1963_p10 }
  0x77   : > { %p1606_p7 = scmp.ne.s32.totalorder %s1959_s19, %s1605_s27  ;;  %s1610_s21 = scalar_lea.hbm %s2104_s0, 768 }
  0x78   : > { %p1611_p1 = scmp.lt.u32.totalorder %s1959_s19, %s2104_s0  ;;  %p1612_p2 = scmp.lt.u32.totalorder %s1610_s21, %s1605_s27 }
  0x79   : > { %p1608_p11 = pnand %p1607_p9, %p1606_p7  ;;  %p1614_p4 = scmp.lt.u32.totalorder %s1605_s27, %s1959_s19 }
  0x7a   : > { %p1613_p12 = por %p1612_p2, %p1611_p1 }
  0x7b   : > { %p1609_p13 = pneg %p1608_p11 }
  0x7c   : > { %p1615_p8 = por %p1614_p4, %p1613_p12 }
  0x7e   : > { %p1616_p6 = pnand %p1615_p8, %p1609_p13 }
  0x80   : > { %1619 = shalt.err (!%p1616_p6)
}
  0x81   : > { %s1620_s29 = scalar_lea.vmem %s1961_s26, 256  ;;  %s1719_s18 = smov [#allocation2]  }
  0x82   : > { %p1621_p0 = scmp.ne.s32.totalorder %s1961_s26, %s1620_s29  ;;  %s1625_s16 = sshll.u32 %s1719_s18, 4  ;;  %s1626_s16 = int_to_ptr.vmem [resolvable:$false] %s1625_s16 }
  0x83   : > { %s1627_s23 = scalar_lea.vmem %s1626_s16, 512  ;;  %p1628_p11 = scmp.lt.s32.totalorder %s1961_s26, %s1626_s16 }
  0x84   : > { %p1623_p5 = pnand %p1621_p0, %p1607_p9  ;;  %p1629_p1 = scmp.lt.s32.totalorder %s1627_s23, %s1620_s29 }
  0x86   : > { %p1624_p7 = pneg %p1623_p5  ;;  %p1630_p2 = por %p1629_p1, %p1628_p11 }
  0x88   : > { %p1631_p12 = pnand %p1630_p2, %p1624_p7 }
  0x8a   : > { %1634 = shalt.err (!%p1631_p12)
}
  0x8b   : > { %1350 = dma.hbm_to_vmem [thread:$0]  (!%p1963_p10), %s1959_s19, 256, %s1961_s26, %s1967_s30, %s1717_s25, %s1717_s25, %s1718_s14  }
  0x8c   : > { %p2131_p9 = scmp.ne.s32.totalorder %s2125_s17, 0 }
  0x8d   : > { %s2001_s27 = sand.u32 (!%p2131_p9), 1, %s1701_s10   ;;  %p2132_p13 = scmp.ne.s32.totalorder (!%p2131_p9), %s2122_s15, 0 }
  0x8e   : > { %353 = sbr.rel (%p2131_p9) target bundleno = 1165 (0x48d), region = 56  ;;  %s1161_s21 = sshll.u32 (!%p2131_p9), %s2001_s27, 4 }
  0x8f   : > { %s356_s24 = scalar_lea.sflag (!%p2131_p9), [#allocation3], %s2001_s27  ;;  %s2007_s22 = scalar_lea.vmem (!%p2131_p9), [#allocation2], %s1161_s21 }
  0x95   : > { %1680 = dma.done.wait (%p2132_p13), %s356_s24, 256  }
  0x96   : > { %1682 = vsyncadd (%p2132_p13), %s356_s24, 4294967040  ;;  %p2133_p10 = scmp.eq.s32.totalorder %s1797_s13, 0 }
  0x98   : > { %1684 = dma.done.wait (%p2133_p10), [#allocation6], 3072   ;;  %p2134_p4 = pmov %p2133_p10 }
  0x9a   : > { %1686 = vsyncadd (%p2134_p4), [#allocation6], 4294964224  ;;  %p2135_p8 = pmov %p2134_p4 }
  0x9b   : > { %p2136_p6 = pmov %p2134_p4 }
  0x9c   : > { %1688 = dma.done.wait (%p2135_p8), [#allocation9], 3072  }
  0x9d   : > { %1690 = vsyncadd (%p2136_p6), [#allocation9], 4294964224  ;;  %v1410_v0 = vld [vmem:[#allocation5 + $0x40] sm:$0xff]   ;;  %v1412_v2 = vld [vmem:[#allocation5 + $0x48] sm:$0xff]   ;;  %v1720_v19 = vmov 0.0   ;;  %vm1721_vm0 = vmmov 0  }
  0x9e   : > { %v1411_v1 = vld [vmem:[#allocation5] sm:$0xff]   ;;  %1234 = vmatprep.subr.bf16.mxu0 %v1410_v0  ;;  %v1413_v3 = vld [vmem:[#allocation5 + $0x8] sm:$0xff]   ;;  %v1414_v4 = vld [vmem:[#allocation5 + $0x50] sm:$0xff]   ;;  %1274 = vmatprep.subr.bf16.mxu1 %v1720_v19  ;;  %s409_s18 = scalar_lea.vmem [#allocation11], %s1161_s21  ;;  %s1233_s23 = sshll.u32 %s1797_s13, 8 }
  0x9f   : > { %1235 = vmatpush3.bf16.msra.mxu0 %v1411_v1  ;;  %v1415_v5 = vld [vmem:[#allocation5 + $0x10] sm:$0xff]   ;;  %v1416_v6 = vld [vmem:[#allocation5 + $0x58] sm:$0xff]   ;;  %v1418_v8 = vld [vmem:[#allocation5 + $0x60] sm:$0xff]   ;;  %1290 = vmatprep.mubr.msk.bf16.mxu1 %vm1721_vm0, %v1720_v19  ;;  %s1038_s16 = sshll.u32 %s409_s18, 4  ;;  %s2137_s15 = sld [smem:[#allocation18_spill]]  ;;  %s2056_s16 = int_to_ptr.vmem [resolvable:$true] %s1038_s16 }
  0xa0   : > { %1236 = vmatprep.subr.bf16.mxu0 %v1412_v2  ;;  %v1417_v7 = vld [vmem:[#allocation5 + $0x18] sm:$0xff]   ;;  %v1419_v9 = vld [vmem:[#allocation5 + $0x20] sm:$0xff]   ;;  %v1420_v10 = vld [vmem:[#allocation5 + $0x68] sm:$0xff]   ;;  %s1024_s21 = scalar_lea.sflag [#allocation4], %s2001_s27  ;;  %s1635_s25 = scalar_lea.vmem %s2056_s16, 256 }
  0xa1   : > { %v1421_v11 = vld [vmem:[#allocation5 + $0x28] sm:$0xff]   ;;  %v1422_v13 = vld [vmem:[#allocation5 + $0x70] sm:$0xff]   ;;  %v1424_v15 = vld [vmem:[#allocation5 + $0x78] sm:$0xff]   ;;  %p1636_p0 = scmp.ne.s32.totalorder %s2056_s16, %s1635_s25  ;;  %s1723_s13 = smov [#allocation11]  }
  0xa2   : > { %v1428_v12 = vld [vmem:[%s2007_s22 + $0x4] ss:$8 sps:$4 sm:$0xff]   ;;  %v1426_v17 = vld [vmem:[%s2007_s22] ss:$8 sps:$4 sm:$0xff]   ;;  %s1639_s14 = sshll.u32 %s1723_s13, 4  ;;  %s1640_s14 = int_to_ptr.vmem [resolvable:$false] %s1639_s14 }
  0xa3   : > { %1237 = vmatpush3.bf16.msra.mxu0 %v1413_v3  ;;  %592 = vmatprep.mubr.bf16.mxu0 %v1428_v12  ;;  %v1423_v14 = vld [vmem:[#allocation5 + $0x30] sm:$0xff]   ;;  %v1425_v16 = vld [vmem:[#allocation5 + $0x38] sm:$0xff]   ;;  %v1429_v18 = vld [vmem:[#allocation7] sm:$0xff]   ;;  %p1637_p5 = pnand %p1636_p0, %p1949_p3  ;;  %s1641_s19 = scalar_lea.vmem %s1640_s14, 512 }
  0xa4   : > { %1238 = vmatprep.subr.bf16.mxu0 %v1414_v4  ;;  %1275 = vmatpush3.bf16.msra.mxu1 %v1429_v18  ;;  %v1430_v20 = vld [vmem:[#allocation7 + $0x8] sm:$0xff]   ;;  %v1431_v21 = vld [vmem:[#allocation7 + $0x10] sm:$0xff]   ;;  %v1432_v22 = vld [vmem:[#allocation7 + $0x18] sm:$0xff]   ;;  %p1642_p11 = scmp.lt.s32.totalorder %s2056_s16, %s1640_s14  ;;  %p1643_p1 = scmp.lt.s32.totalorder %s1641_s19, %s1635_s25 }
  0xa5   : > { %1276 = vmatprep.subr.bf16.mxu1 %v1720_v19  ;;  %v1433_v23 = vld [vmem:[#allocation7 + $0x20] sm:$0xff]   ;;  %v1434_v24 = vld [vmem:[#allocation7 + $0x28] sm:$0xff]   ;;  %v1435_v25 = vld [vmem:[#allocation7 + $0x30] sm:$0xff]   ;;  %s2061_s17 = scalar_lea.hbm %s2137_s15, %s1233_s23  ;;  %p1638_p7 = pneg %p1637_p5 }
  0xa6   : > { %v1436_v26 = vld [vmem:[#allocation7 + $0x38] sm:$0xff]   ;;  %v1167_v28 = vld [vmem:[%s2106_s2] ss:$0 sm:$0xff]  ;;  %v1438_v48 = vld [vmem:[#allocation8 + $0x8] sm:$0xff]   ;;  %p1644_p2 = por %p1643_p1, %p1642_p11 }
  0xa7   : > { %1239 = vmatpush3.bf16.msra.mxu0 %v1415_v5  ;;  %v1437_v47 = vld [vmem:[#allocation8] sm:$0xff]   ;;  %v1439_v49 = vld [vmem:[#allocation8 + $0x10] sm:$0xff]   ;;  %v1440_v50 = vld [vmem:[#allocation8 + $0x18] sm:$0xff]  }
  0xa8   : > { %1240 = vmatprep.subr.bf16.mxu0 %v1416_v6  ;;  %1277 = vmatpush3.bf16.msra.mxu1 %v1430_v20  ;;  %v1441_v51 = vld [vmem:[#allocation8 + $0x20] sm:$0xff]   ;;  %v1442_v52 = vld [vmem:[#allocation8 + $0x28] sm:$0xff]   ;;  %v1443_v53 = vld [vmem:[#allocation8 + $0x30] sm:$0xff]   ;;  %p1645_p12 = pnand %p1644_p2, %p1638_p7 }
  0xa9   : > { %1278 = vmatprep.subr.bf16.mxu1 %v1720_v19  ;;  %v1444_v54 = vld [vmem:[#allocation8 + $0x38] sm:$0xff]   ;;  %v1186_v55 = vld [vmem:[%s2108_s4] ss:$0 sm:$0xff] }
  0xaa   : > { %v1448_v12 = vld [vmem:[#allocation10 + $0x10] ss:$8 sps:$4 sm:$0xff]   ;;  %v1457_v18 = vld [vmem:[#allocation10 + $0x40] ss:$8 sps:$4 sm:$0xff]  }
  0xab   : > { %1241 = vmatpush3.bf16.msra.mxu0 %v1417_v7  ;;  %v1460_v20 = vld [vmem:[#allocation10 + $0x50] ss:$8 sps:$4 sm:$0xff]  }
  0xac   : > { %1242 = vmatprep.subr.bf16.mxu0 %v1418_v8  ;;  %1279 = vmatpush3.bf16.msra.mxu1 %v1431_v21  ;;  %v1465_v21 = vld [vmem:[#allocation10 + $0x64] ss:$8 sps:$4 sm:$0xff]  }
  0xad   : > { %1280 = vmatprep.subr.bf16.mxu1 %v1720_v19 }
  0xaf   : > { %1243 = vmatpush3.bf16.msra.mxu0 %v1419_v9  ;;  %v1447_v9 = vld [vmem:[#allocation10 + $0x4] ss:$8 sps:$4 sm:$0xff]  }
  0xb0   : > { %1244 = vmatprep.subr.bf16.mxu0 %v1420_v10  ;;  %1281 = vmatpush3.bf16.msra.mxu1 %v1432_v22  ;;  %v1445_v10 = vld [vmem:[#allocation10] ss:$8 sps:$4 sm:$0xff]  }
  0xb1   : > { %1282 = vmatprep.subr.bf16.mxu1 %v1720_v19  ;;  %v1463_v22 = vld [vmem:[#allocation10 + $0x60] ss:$8 sps:$4 sm:$0xff]  }
  0xb3   : > { %1245 = vmatpush3.bf16.msra.mxu0 %v1421_v11  ;;  %v1450_v11 = vld [vmem:[#allocation10 + $0x14] ss:$8 sps:$4 sm:$0xff]  }
  0xb4   : > { %1246 = vmatprep.subr.bf16.mxu0 %v1422_v13  ;;  %1283 = vmatpush3.bf16.msra.mxu1 %v1433_v23  ;;  %v1453_v13 = vld [vmem:[#allocation10 + $0x24] ss:$8 sps:$4 sm:$0xff]   ;;  %v1722_v23 = vmov 0  }
  0xb5   : > { %1284 = vmatprep.subr.bf16.mxu1 %v1720_v19 }
  0xb7   : > { %1247 = vmatpush3.bf16.msra.mxu0 %v1423_v14  ;;  %v1451_v14 = vld [vmem:[#allocation10 + $0x20] ss:$8 sps:$4 sm:$0xff]  }
  0xb8   : > { %1248 = vmatprep.subr.bf16.mxu0 %v1424_v15  ;;  %1285 = vmatpush3.bf16.msra.mxu1 %v1434_v24  ;;  %v1456_v15 = vld [vmem:[#allocation10 + $0x34] ss:$8 sps:$4 sm:$0xff]  }
  0xb9   : > { %1286 = vmatprep.subr.bf16.mxu1 %v1720_v19  ;;  %v1468_v24 = vld [vmem:[#allocation10 + $0x74] ss:$8 sps:$4 sm:$0xff]  }
  0xbb   : > { %1249 = vmatpush3.bf16.msra.mxu0 %v1425_v16  ;;  %v1454_v16 = vld [vmem:[#allocation10 + $0x30] ss:$8 sps:$4 sm:$0xff]  }
  0xbc   : > { %1294 = vmatprep.subr.bf16.mxu0 %v1720_v19  ;;  %1287 = vmatpush3.bf16.msra.mxu1 %v1435_v25  ;;  %v1466_v25 = vld [vmem:[#allocation10 + $0x70] ss:$8 sps:$4 sm:$0xff]  }
  0xbd   : > { %1288 = vmatprep.subr.bf16.mxu1 %v1720_v19 }
  0xbe   : > { %593 = vmatmul.mubr.bf16.vlgmr.msra.gmra.mrb[0].mxu0 %v1426_v17  ;;  %v1459_v17 = vld [vmem:[#allocation10 + $0x44] ss:$8 sps:$4 sm:$0xff]  }
  0xbf   : > { %1310 = vmatprep.mubr.msk.bf16.mxu0 %vm1721_vm0, %v1720_v19  ;;  %1295 = vmatpush3.bf16.msra.mxu0 %v1437_v47  ;;  %v874_v47 = vld [vmem:[%s2112_s8] sm:$0x3] }
  0xc0   : > { %1289 = vmatpush3.bf16.msra.mxu1 %v1436_v26  ;;  %1296 = vmatprep.subr.bf16.mxu0 %v1720_v19  ;;  %v1195_v26 = vld [vmem:[%s2110_s6] ss:$0 sm:$0xff] }
  0xc1   : > { %966 = vmatprep.subr.bf16.mxu1 %v1447_v9 }
  0xc3   : > { %1297 = vmatpush3.bf16.msra.mxu0 %v1438_v48 }
  0xc4   : > { %1298 = vmatprep.subr.bf16.mxu0 %v1720_v19 }
  0xc7   : > { %1299 = vmatpush3.bf16.msra.mxu0 %v1439_v49 }
  0xc8   : > { %1300 = vmatprep.subr.bf16.mxu0 %v1720_v19 }
  0xcb   : > { %1301 = vmatpush3.bf16.msra.mxu0 %v1440_v50 }
  0xcc   : > { %1302 = vmatprep.subr.bf16.mxu0 %v1720_v19 }
  0xcf   : > { %1303 = vmatpush3.bf16.msra.mxu0 %v1441_v51 }
  0xd0   : > { %1304 = vmatprep.subr.bf16.mxu0 %v1720_v19 }
  0xd3   : > { %1305 = vmatpush3.bf16.msra.mxu0 %v1442_v52 }
  0xd4   : > { %1306 = vmatprep.subr.bf16.mxu0 %v1720_v19 }
  0xd7   : > { %1307 = vmatpush3.bf16.msra.mxu0 %v1443_v53 }
  0xd8   : > { %1308 = vmatprep.subr.bf16.mxu0 %v1720_v19  ;;  %v1462_v19 = vld [vmem:[#allocation10 + $0x54] ss:$8 sps:$4 sm:$0xff]  }
  0xdb   : > { %1309 = vmatpush3.bf16.msra.mxu0 %v1444_v54 }
 0x191   : > { %v1250_v27 = vpop.f32.mrb[0].mxu0 }
 0x192   : > { %v1251_v29 = vpop.f32.mrb[1].mxu0 }
 0x193   : > { %v1252_v30 = vadd.f32 %v1251_v29, %v1250_v27  ;;  %v1253_v31 = vpop.f32.mrb[2].mxu0 }
 0x194   : > { %v1254_v32 = vpop.f32.mrb[3].mxu0 }
 0x195   : > { %v595_v33 = vadd.f32 %v1252_v30, %v1167_v28  ;;  %v1255_v34 = vadd.f32 %v1254_v32, %v1253_v31 }
 0x197   : > { %v601_v35 = vsub.f32 0.0, %v595_v33  ;;  %v598_v36 = vadd.f32 %v1255_v34, %v1167_v28 }
 0x199   : > { %v603_v37 = vmul.f32 1.442695, %v601_v35  ;;  %v602_v38 = vsub.f32 0.0, %v598_v36 }
 0x19b   : > { %1469 = vpow2.f32 %v603_v37  ;;  %v605_v39 = vmul.f32 1.442695, %v602_v38 }
 0x19d   : > { %1471 = vpow2.f32 %v605_v39 }
 0x1a5   : > { %v1470_v40 = vpop.eup %1469 }
 0x1a6   : > { %v607_v41 = vadd.f32 1.0, %v1470_v40 }
 0x1a7   : > { %v1472_v42 = vpop.eup %1471 }
 0x1a8   : > { %v608_v43 = vadd.f32 1.0, %v1472_v42  ;;  %1473 = vrcp.f32 %v607_v41 }
 0x1aa   : > { %1475 = vrcp.f32 %v608_v43 }
 0x1b2   : > { %v1474_v44 = vpop.eup %1473 }
 0x1b4   : > { %v1476_v45 = vpop.eup %1475 }
 0x1b5   : > { %v611_v46 = vpack.c.bf16 %v1476_v45, %v1474_v44  ;;  %v876_v44 = vlaneseq }
 0x1b7   : > { %1291 = vmatmul.mubr.bf16.vlgmr.msra.gmra.mrb[0].mxu1 %v611_v46  ;;  %v877_v45 = vshrl.u32 %v876_v44, 7 }
 0x1b8   : > { %967 = vmatpush1.bf16.msra.mxu1 %v1445_v10  ;;  %998 = vmatprep.mubr.bf16.mxu1 %v1722_v23 }
 0x1b9   : > { %968 = vmatprep.subr.bf16.mxu1 %v1450_v11  ;;  %v878_v46 = vsub.s32 0, %v877_v45  ;;  %v882_v48 = vsub.s32 1, %v877_v45 }
 0x1bb   : > { %v879_v49 = vrot.slane %v874_v47, %v878_v46  ;;  %v883_v50 = vrot.slane %v874_v47, %v882_v48 }
 0x1bc   : > { %969 = vmatpush1.bf16.msra.mxu1 %v1448_v12 }
 0x1bd   : > { %970 = vmatprep.subr.bf16.mxu1 %v1453_v13 }
 0x1c0   : > { %971 = vmatpush1.bf16.msra.mxu1 %v1451_v14 }
 0x1c1   : > { %972 = vmatprep.subr.bf16.mxu1 %v1456_v15 }
 0x1c4   : > { %973 = vmatpush1.bf16.msra.mxu1 %v1454_v16 }
 0x1c5   : > { %974 = vmatprep.subr.bf16.mxu1 %v1459_v17 }
 0x1c8   : > { %975 = vmatpush1.bf16.msra.mxu1 %v1457_v18 }
 0x1c9   : > { %976 = vmatprep.subr.bf16.mxu1 %v1462_v19 }
 0x1cc   : > { %977 = vmatpush1.bf16.msra.mxu1 %v1460_v20 }
 0x1cd   : > { %978 = vmatprep.subr.bf16.mxu1 %v1465_v21 }
 0x1d0   : > { %979 = vmatpush1.bf16.msra.mxu1 %v1463_v22 }
 0x1d1   : > { %980 = vmatprep.subr.bf16.mxu1 %v1468_v24 }
 0x1d4   : > { %981 = vmatpush1.bf16.msra.mxu1 %v1466_v25 }
 0x28a   : > { %v717_v56 = vpop.f32.mrb[0].mxu1 }
 0x28b   : > { %v718_v57 = vadd.f32 %v1186_v55, %v717_v56  ;;  %v1292_v58 = vpop.f32.mrb[1].mxu1 }
 0x28c   : > { %v720_v59 = vpop.f32.mrb[2].mxu1 }
 0x28d   : > { %v724_v60 = vsub.f32 0.0, %v718_v57  ;;  %v721_v61 = vadd.f32 %v1186_v55, %v720_v59  ;;  %v1293_v62 = vpop.f32.mrb[3].mxu1 }
 0x28f   : > { %v726_v63 = vmul.f32 1.442695, %v724_v60  ;;  %v725_v0 = vsub.f32 0.0, %v721_v61 }
 0x291   : > { %1477 = vpow2.f32 %v726_v63  ;;  %v728_v1 = vmul.f32 1.442695, %v725_v0 }
 0x293   : > { %1479 = vpow2.f32 %v728_v1 }
 0x29b   : > { %v1478_v2 = vpop.eup %1477 }
 0x29c   : > { %v730_v3 = vadd.f32 1.0, %v1478_v2 }
 0x29d   : > { %v1480_v4 = vpop.eup %1479 }
 0x29e   : > { %v731_v5 = vadd.f32 1.0, %v1480_v4  ;;  %1481 = vrcp.f32 %v730_v3 }
 0x2a0   : > { %1483 = vrcp.f32 %v731_v5 }
 0x2a8   : > { %v1482_v6 = vpop.eup %1481 }
 0x2aa   : > { %v1484_v7 = vpop.eup %1483 }
 0x2ab   : > { %v734_v8 = vpack.c.bf16 %v1484_v7, %v1482_v6 }
 0x2ad   : > { %1311 = vmatmul.mubr.bf16.vlgmr.msra.gmra.mrb[4].mxu0 %v734_v8 }
 0x380   : > { %v840_v27 = vpop.f32.mrb[4].mxu0 }
 0x381   : > { %v841_v28 = vadd.f32 %v1195_v26, %v840_v27  ;;  %v1312_v29 = vpop.f32.mrb[5].mxu0 }
 0x382   : > { %v843_v30 = vpop.f32.mrb[6].mxu0 }
 0x383   : > { %v847_v31 = vsub.f32 0.0, %v841_v28  ;;  %v844_v32 = vadd.f32 %v1195_v26, %v843_v30  ;;  %v1313_v33 = vpop.f32.mrb[7].mxu0 }
 0x385   : > { %v849_v34 = vmul.f32 1.442695, %v847_v31  ;;  %v848_v35 = vsub.f32 0.0, %v844_v32 }
 0x387   : > { %1485 = vpow2.f32 %v849_v34  ;;  %v851_v36 = vmul.f32 1.442695, %v848_v35 }
 0x389   : > { %1487 = vpow2.f32 %v851_v36 }
 0x391   : > { %v1486_v37 = vpop.eup %1485 }
 0x392   : > { %v853_v38 = vadd.f32 1.0, %v1486_v37 }
 0x393   : > { %v1488_v39 = vpop.eup %1487 }
 0x394   : > { %v854_v40 = vadd.f32 1.0, %v1488_v39  ;;  %1489 = vrcp.f32 %v853_v38 }
 0x396   : > { %1491 = vrcp.f32 %v854_v40 }
 0x39e   : > { %v1490_v41 = vpop.eup %1489 }
 0x3a0   : > { %v1492_v42 = vpop.eup %1491 }
 0x3a1   : > { %v857_v43 = vpack.c.bf16 %v1492_v42, %v1490_v41 }
 0x3a3   : > { %999 = vmatmul.mubr.bf16.vlgmr.msra.gmra.mrb[4].mxu1 %v857_v43 }
 0x476   : > { %v1000_v51 = vpop.f32.mrb[4].mxu1 }
 0x477   : > { %v1001_v52 = vadd.f32 %v1000_v51, %v879_v49  ;;  %v1002_v53 = vpop.f32.mrb[5].mxu1 }
 0x478   : > { %v1003_v54 = vadd.f32 %v1002_v53, %v883_v50  ;;  %v1004_v55 = vpop.f32.mrb[6].mxu1 }
 0x479   : > { %v1005_v56 = vadd.f32 %v1004_v55, %v879_v49  ;;  %v1006_v57 = vpop.f32.mrb[7].mxu1 }
 0x47a   : > { %v1230_v58 = vpack.c.bf16 %v1003_v54, %v1001_v52  ;;  %v1007_v59 = vadd.f32 %v1006_v57, %v883_v50 }
 0x47c   : > { %1021 = vst [vmem:[%s409_s18] sm:$0xff] %v1230_v58  ;;  %v1231_v60 = vpack.c.bf16 %v1007_v59, %v1005_v56 }
 0x47e   : > { %1022 = vst [vmem:[%s409_s18 + $0x8] sm:$0xff] %v1231_v60 }
 0x47f   : > { %1648 = shalt.err (!%p1645_p12)
}
 0x480   : > { %s1649_s26 = scalar_lea.hbm %s2061_s17, 256  ;;  %s1653_s18 = scalar_lea.hbm %s2137_s15, 768 }
 0x481   : > { %p1650_p9 = scmp.ne.s32.totalorder %s2061_s17, %s1649_s26  ;;  %p1654_p4 = scmp.lt.u32.totalorder %s2061_s17, %s2137_s15 }
 0x482   : > { %p1655_p8 = scmp.lt.u32.totalorder %s1653_s18, %s1649_s26  ;;  %p1657_p0 = scmp.lt.u32.totalorder %s1649_s26, %s2061_s17 }
 0x483   : > { %p1651_p13 = pnand %p1650_p9, %p1949_p3 }
 0x484   : > { %p1656_p6 = por %p1655_p8, %p1654_p4 }
 0x485   : > { %p1652_p10 = pneg %p1651_p13 }
 0x486   : > { %p1658_p5 = por %p1657_p0, %p1656_p6 }
 0x488   : > { %p1659_p7 = pnand %p1658_p5, %p1652_p10 }
 0x48a   : > { %1662 = shalt.err (!%p1659_p7)
}
 0x48b   : > { %s1724_s22 = smov 128   ;;  %s1725_s25 = smov 8  }
 0x48c   : > { %1332 = dma.vmem_to_hbm [thread:$0]  (%p1949_p3), %s2056_s16, 256, %s2061_s17, %s1024_s21, %s1724_s22, %s1724_s22, %s1725_s25  }
 0x48d PF: > { %s2138_s13 = sld [smem:[#allocation16_spill]]  ;;  %s2139_s14 = sld [smem:[#allocation17_spill]] }
 0x48e   : > { %p1364_p11 = scmp.ge.s32.totalorder %s1709_s12, 2 }
 0x493   : > { %s1053_s19 = sand.u32 1, %s2138_s13   ;;  %p2140_p1 = scmp.ne.s32.totalorder %s2139_s14, 0 }
 0x494   : > { %s1054_s26 = scalar_lea.sflag [#allocation4], %s1053_s19 }
 0x495   : > { %p1352_p2 = pnand %p1364_p11, %p2140_p1 }
 0x497   : > { %1692 = dma.done.wait (!%p1352_p2), %s1054_s26, 256  }
 0x498   : > { %1694 = vsyncadd (!%p1352_p2), %s1054_s26, 4294967040  ;;  %p24_p12 = scmp.ge.s32.totalorder %s1936_s9, 5   ;;  %s2141_s30 = smov %s1701_s10 }
 0x499   : > { %s2142_s10 = smov %s1705_s11  ;;  %s2143_s11 = smov %s1945_s28 }
 0x49a   : > { %s2144_s12 = smov %s1936_s9  ;;  %26 = sbr.rel (!%p24_p12) target bundleno = 9 (0x9), region = 117 }
 0x4a1   :  { %1059 = vsyncpa [#allocation3], 1 }
 0x4a2   :  { %1061 = vsyncpa [#allocation3 + $0x1], 1 }
 0x4a3   :  { %1062 = vsyncpa [#allocation6], 1 }
 0x4a4   :  { %1063 = vsyncpa [#allocation9], 1 }
 0x4a5   :  { %1064 = vsyncpa [#allocation4], 1 }
 0x4a6   :  { %1066 = vsyncpa [#allocation4 + $0x1], 1 }

</bundles_post_ra>
